<compile_context>
chip_gen: v6e
topology: v6e:2x2x1
jax: 0.10.0
libtpu: 0.0.40
codegen_flags: <defaults>
</compile_context>

<pallas_src>
import jax
import jax.numpy as jnp
from jax.experimental import pallas as pl
from jax.experimental.pallas import tpu as pltpu

_LANE = 128
_SUBLANE = 16                              # bf16 sublane packing (multiple of f32's 8)
_DEFAULT_SCOPED_VMEM = 32 * 1024 * 1024
_MAX_VMEM_REQUEST = 48 * 1024 * 1024       # leave headroom on v7x (64 MiB physical/TC)


def _round_up(x, m):
    return ((x + m - 1) // m) * m


# ----------------------------------------------------------------------------
# Pallas kernel
# ----------------------------------------------------------------------------
def res_gconv_gru_kernel(L_ref, X_ref, H_ref, Wall_ref, Whh_ref, b_ref, out_ref):
    """Single-invocation fused ResGConvGRU cell.

    L_ref   : [Np, Np]            bf16 scaled Laplacian (zero-padded)
    X_ref   : [Np, Cin_p]         f32 node features (zero-padded)
    H_ref   : [Np, Cp]            f32 hidden state (zero-padded)
    Wall_ref: [K*(Cin_p+Cp), 3Cp] bf16 fused weights: per-k rows [Wx_z|Wx_r|Wx_h ;
                                                                  Wh_z|Wh_r|  0  ]
    Whh_ref : [K*Cp, Cp]          bf16 H-side candidate weights
    b_ref   : [1, 3*Cp]           f32 fused biases (b_xz+b_hz | b_xr+b_hr | b_xh+b_hh)
    out_ref : [Np, Cp]            f32 new hidden state
    """
    f32, bf16 = jnp.float32, jnp.bfloat16
    Cin_p = X_ref.shape[1]
    Cp = H_ref.shape[1]
    Cb = Cin_p + Cp
    K = Wall_ref.shape[0] // Cb

    L = L_ref[...]                        # bf16, MXU-stationary across all basis matmuls
    X = X_ref[...]                        # f32
    H = H_ref[...]                        # f32

    def cheb_accumulate(A, w_ref, stride, acc):
        """acc + sum_k T_k(L_hat) @ A @ W_k.

        Chebyshev carries T_k and the accumulator stay in f32; only the MXU
        operands are cast to bf16 (f32 accumulation via preferred_element_type).
        Weights are sliced statically per k (k is a Python int, fully unrolled).
        """
        t_prev, t_curr = None, A
        acc = acc + jnp.dot(t_curr.astype(bf16), w_ref[0:stride, :],
                            preferred_element_type=f32)
        for k in range(1, K):
            p = jnp.dot(L, t_curr.astype(bf16), preferred_element_type=f32)
            t_next = p if k == 1 else 2.0 * p - t_prev
            t_prev, t_curr = t_curr, t_next
            acc = acc + jnp.dot(t_curr.astype(bf16),
                                w_ref[k * stride:(k + 1) * stride, :],
                                preferred_element_type=f32)
        return acc

    # ---- Phase 1: one Chebyshev recurrence on the fused operand B = [X | H] ----
    # Gives the X-side z/r/h and H-side z/r gate contributions in K wide matmuls.
    B = jnp.concatenate([X, H], axis=1)               # f32 [Np, Cb]
    G = cheb_accumulate(B, Wall_ref, Cb, b_ref[...])  # [Np, 3*Cp] (bias broadcast once)

    Z = jax.nn.sigmoid(G[:, 0 * Cp:1 * Cp])
    R = jax.nn.sigmoid(G[:, 1 * Cp:2 * Cp])

    # ---- Phase 2: recurrence on H*R (depends on R, cannot be fused into phase 1) ----
    S = cheb_accumulate(H * R, Whh_ref, Cp, G[:, 2 * Cp:3 * Cp])

    H_tilde = jnp.tanh(S) + S                          # residual variant of the module
    out_ref[...] = Z * H + (1.0 - Z) * H_tilde


# ----------------------------------------------------------------------------
# Per-graph / per-parameter packing (hoisted: call ONCE, reuse every timestep)
# ----------------------------------------------------------------------------
def prepare_res_gconv_gru(L_hat, params, K, in_channels, out_channels):
    f32, bf16 = jnp.float32, jnp.bfloat16
    N = L_hat.shape[0]
    Np = _round_up(max(N, _SUBLANE), _SUBLANE)   # node/M dim: sublane multiple only
    Cin_p = _round_up(in_channels, _LANE)        # lane dims: 128-multiples
    Cp = _round_up(out_channels, _LANE)
    Cb = Cin_p + Cp

    # Laplacian stored in bf16 (dominant buffer; halves VMEM/HBM traffic).
    Lp = jnp.zeros((Np, Np), f32).at[:N, :N].set(L_hat.astype(f32)).astype(bf16)

    def pad_kw(W, rows):
        W = jnp.asarray(W, f32)
        return jnp.zeros((K, rows, Cp), f32).at[:, :W.shape[1], :out_channels].set(W)

    # Fused weight slab: per-k block rows = [X-rows ; H-rows], columns = [z | r | h].
    x_blk = jnp.concatenate([pad_kw(params["W_x_z"], Cin_p),
                             pad_kw(params["W_x_r"], Cin_p),
                             pad_kw(params["W_x_h"], Cin_p)], axis=2)   # [K, Cin_p, 3Cp]
    h_blk = jnp.concatenate([pad_kw(params["W_h_z"], Cp),
                             pad_kw(params["W_h_r"], Cp),
                             jnp.zeros((K, Cp, Cp), f32)], axis=2)      # [K, Cp, 3Cp]
    W_all = jnp.concatenate([x_blk, h_blk], axis=1).reshape(K * Cb, 3 * Cp).astype(bf16)
    W_hh = pad_kw(params["W_h_h"], Cp).reshape(K * Cp, Cp).astype(bf16)

    def pad_b(b):
        b = jnp.asarray(b, f32).reshape(-1)
        return jnp.zeros((1, Cp), f32).at[0, :out_channels].set(b)

    b_all = jnp.concatenate([pad_b(params["b_x_z"] + params["b_h_z"]),
                             pad_b(params["b_x_r"] + params["b_h_r"]),
                             pad_b(params["b_x_h"] + params["b_h_h"])], axis=1)

    return dict(L=Lp, W_all=W_all, W_hh=W_hh, b_all=b_all,
                N=N, Np=Np, Cin=in_channels, Cout=out_channels,
                Cin_p=Cin_p, Cp=Cp, K=K)


# ----------------------------------------------------------------------------
# One GRU step on padded operands (keep H padded across a recurrent scan).
# Padded rows hold bounded bias-driven values but never leak into valid rows
# (L's padded rows/cols are zero); slice [:N, :Cout] only after the last step.
# ----------------------------------------------------------------------------
def res_gconv_gru_step(packed, Xp, Hp):
    Np, Cin_p, Cp = packed["Np"], packed["Cin_p"], packed["Cp"]
    Cb = Cin_p + Cp
    operands = (packed["L"], Xp, Hp, packed["W_all"], packed["W_hh"], packed["b_all"])

    # Only raise the VMEM limit above the default when the footprint needs it,
    # and never request the full physical VMEM (v7x has 64 MiB per TensorCore).
    op_bytes = sum(int(a.size) * a.dtype.itemsize for a in operands)
    interm_bytes = Np * (2 * Cb + 8 * Cp) * 4          # f32 carries + gate temporaries
    need = 2 * op_bytes + interm_bytes + Np * Cp * 4 + (2 << 20)
    compiler_params = None
    if need > _DEFAULT_SCOPED_VMEM:
        compiler_params = pltpu.CompilerParams(
            vmem_limit_bytes=min(need, _MAX_VMEM_REQUEST))

    vmem = lambda: pl.BlockSpec(memory_space=pltpu.MemorySpace.VMEM)
    return pl.pallas_call(
        res_gconv_gru_kernel,
        out_shape=jax.ShapeDtypeStruct((Np, Cp), jnp.float32),
        in_specs=[vmem() for _ in operands],
        out_specs=vmem(),
        compiler_params=compiler_params,
    )(*operands)


def res_gconv_gru(L_hat, X, H, params, K):
    """Convenience single-call wrapper (prepare + pad + step + slice)."""
    packed = prepare_res_gconv_gru(L_hat, params, K, X.shape[1], H.shape[1])
    N, Np, Cin_p, Cp = packed["N"], packed["Np"], packed["Cin_p"], packed["Cp"]
    f32 = jnp.float32
    Xp = jnp.zeros((Np, Cin_p), f32).at[:N, :X.shape[1]].set(X.astype(f32))
    Hp = jnp.zeros((Np, Cp), f32).at[:N, :H.shape[1]].set(H.astype(f32))
    out = res_gconv_gru_step(packed, Xp, Hp)
    return out[:N, :packed["Cout"]]


# ----------------------------------------------------------------------------
# Plain-JAX glue: dense scaled Laplacian (ChebConv sym norm, lambda_max=2.0)
# ----------------------------------------------------------------------------
def scaled_laplacian(edge_index, edge_weight, num_nodes, lambda_max=2.0):
    row, col = edge_index
    A = jnp.zeros((num_nodes, num_nodes), jnp.float32).at[row, col].add(edge_weight)
    deg = A.sum(axis=1)
    dinv = jnp.where(deg > 0, 1.0 / jnp.sqrt(deg), 0.0)
    L = jnp.eye(num_nodes, dtype=jnp.float32) - dinv[:, None] * A * dinv[None, :]
    return (2.0 / lambda_max) * L - jnp.eye(num_nodes, dtype=jnp.float32)


# ----------------------------------------------------------------------------
# Pure-JAX reference (per-gate convs). cast_dtype=None -> f32 module semantics;
# cast_dtype=bf16 -> same mixed precision as the kernel (bf16 MXU, f32 accum).
# ----------------------------------------------------------------------------
def _cheb_conv_ref(L, A, W, b, cast_dtype=None):
    if cast_dtype is None:
        mm = lambda a, c: jnp.dot(a, c, preferred_element_type=jnp.float32)
    else:
        mm = lambda a, c: jnp.dot(a.astype(cast_dtype), c.astype(cast_dtype),
                                  preferred_element_type=jnp.float32)
    Kk = W.shape[0]
    t_prev, t_curr = None, A
    out = mm(A, W[0])
    for k in range(1, Kk):
        p = mm(L, t_curr)
        t_next = p if k == 1 else 2.0 * p - t_prev
        t_prev, t_curr = t_curr, t_next
        out = out + mm(t_curr, W[k])
    return out + b


def res_gconv_gru_ref(L, X, H, p, cast_dtype=None):
    cc = lambda A, W, b: _cheb_conv_ref(L, A, W, b, cast_dtype)
    Z = jax.nn.sigmoid(cc(X, p["W_x_z"], p["b_x_z"]) + cc(H, p["W_h_z"], p["b_h_z"]))
    R = jax.nn.sigmoid(cc(X, p["W_x_r"], p["b_x_r"]) + cc(H, p["W_h_r"], p["b_h_r"]))
    ht1 = cc(X, p["W_x_h"], p["b_x_h"])
    ht2 = cc(H * R, p["W_h_h"], p["b_h_h"])
    s = ht1 + ht2
    h_tilde = jnp.tanh(s) + s
    return Z * H + (1.0 - Z) * h_tilde


# ----------------------------------------------------------------------------
# main
# ----------------------------------------------------------------------------
if __name__ == "__main__":
    N = 16            # number of graph nodes
    Cin = 4           # in_channels
    Cout = 8          # out_channels
    K = 3             # Chebyshev filter size

    key = jax.random.PRNGKey(0)
    keys = jax.random.split(key, 16)

    X = jax.random.normal(keys[0], (N, Cin), dtype=jnp.float32)
    H = jax.random.normal(keys[1], (N, Cout), dtype=jnp.float32)

    # symmetric ring graph with random positive weights
    src = jnp.arange(N, dtype=jnp.int32)
    dst = (src + 1) % N
    w = jax.random.uniform(keys[2], (N,), jnp.float32, minval=0.5, maxval=1.5)
    edge_index = jnp.stack([jnp.concatenate([src, dst]),
                            jnp.concatenate([dst, src])], axis=0)
    edge_weight = jnp.concatenate([w, w])
    L_hat = scaled_laplacian(edge_index, edge_weight, N, lambda_max=2.0)

    # deterministic parameters (ChebConv weights [K, Cin, Cout], bias [1, Cout])
    def init_conv(k, cin):
        kw, kb = jax.random.split(k)
        scale = 1.0 / jnp.sqrt(jnp.float32(cin * K))
        W = jax.random.uniform(kw, (K, cin, Cout), jnp.float32, -scale, scale)
        b = jax.random.uniform(kb, (1, Cout), jnp.float32, -scale, scale)
        return W, b

    params = {}
    for i, (name, cin) in enumerate([("x_z", Cin), ("h_z", Cout), ("x_r", Cin),
                                     ("h_r", Cout), ("x_h", Cin), ("h_h", Cout)]):
        W, b = init_conv(keys[3 + i], cin)
        params[f"W_{name}"], params[f"b_{name}"] = W, b

    out = jax.block_until_ready(res_gconv_gru(L_hat, X, H, params, K))
    assert out.shape == (N, Cout)

    # Tight check vs a reference using the same mixed precision (bf16 MXU operands,
    # f32 accumulation) -> validates the packing / fusion / gate math exactly.
    ref_mixed = res_gconv_gru_ref(L_hat, X, H, params, cast_dtype=jnp.bfloat16)
    assert jnp.allclose(out, ref_mixed, atol=2e-3, rtol=2e-3), "mismatch vs mixed-precision reference"

    # Loose check vs the pure-f32 module semantics -> bounds the bf16 rounding error.
    ref_f32 = res_gconv_gru_ref(L_hat, X, H, params)
    assert jnp.allclose(out, ref_f32, atol=1e-1, rtol=1e-1), "bf16 error vs f32 reference too large"

    print("KERNEL_OK")
</pallas_src>

<mosaic_0001>
module attributes {stable_mosaic.version = 11 : i64} {
  func.func @res_gconv_gru_kernel(%arg0: memref<16x16xbf16, #tpu.memory_space<vmem>>, %arg1: memref<16x128xf32, #tpu.memory_space<vmem>>, %arg2: memref<16x128xf32, #tpu.memory_space<vmem>>, %arg3: memref<768x384xbf16, #tpu.memory_space<vmem>>, %arg4: memref<384x128xbf16, #tpu.memory_space<vmem>>, %arg5: memref<1x384xf32, #tpu.memory_space<vmem>>, %arg6: memref<16x128xf32, #tpu.memory_space<vmem>>) attributes {dimension_semantics = [], scalar_prefetch = 0 : i64, scratch_operands = 0 : i64, tpu.core_type = #tpu.core_type<tc>} {
    %c0 = arith.constant 0 : index
    %c0_0 = arith.constant 0 : index
    %0 = vector.load %arg0[%c0, %c0_0] : memref<16x16xbf16, #tpu.memory_space<vmem>>, vector<16x16xbf16>
    %c0_1 = arith.constant 0 : index
    %c0_2 = arith.constant 0 : index
    %1 = vector.load %arg1[%c0_1, %c0_2] : memref<16x128xf32, #tpu.memory_space<vmem>>, vector<16x128xf32>
    %c0_3 = arith.constant 0 : index
    %c0_4 = arith.constant 0 : index
    %2 = vector.load %arg2[%c0_3, %c0_4] : memref<16x128xf32, #tpu.memory_space<vmem>>, vector<16x128xf32>
    %3 = tpu.concatenate %1, %2 in 1 : vector<16x128xf32>, vector<16x128xf32> -> vector<16x256xf32>
    %c0_5 = arith.constant 0 : index
    %c0_6 = arith.constant 0 : index
    %4 = vector.load %arg5[%c0_5, %c0_6] : memref<1x384xf32, #tpu.memory_space<vmem>>, vector<1x384xf32>
    %5 = arith.truncf %3 : vector<16x256xf32> to vector<16x256xbf16>
    %c0_7 = arith.constant 0 : index
    %c0_8 = arith.constant 0 : index
    %6 = vector.load %arg3[%c0_7, %c0_8] : memref<768x384xbf16, #tpu.memory_space<vmem>>, vector<256x384xbf16>
    %cst = arith.constant dense<0.000000e+00> : vector<16x384xf32>
    %7 = tpu.matmul %5, %6, %cst {dimension_numbers = #tpu.dot_dimension_numbers<[1], [0], [0], [1], [0, 0, 1, 1], [], []>} : vector<16x256xbf16>, vector<256x384xbf16>, vector<16x384xf32> -> vector<16x384xf32>
    %8 = vector.broadcast %4 : vector<1x384xf32> to vector<16x384xf32>
    %9 = arith.addf %8, %7 : vector<16x384xf32>
    %10 = arith.truncf %3 : vector<16x256xf32> to vector<16x256xbf16>
    %cst_9 = arith.constant dense<0.000000e+00> : vector<16x256xf32>
    %11 = tpu.matmul %0, %10, %cst_9 {dimension_numbers = #tpu.dot_dimension_numbers<[1], [0], [0], [1], [0, 0, 1, 1], [], []>} : vector<16x16xbf16>, vector<16x256xbf16>, vector<16x256xf32> -> vector<16x256xf32>
    %12 = arith.truncf %11 : vector<16x256xf32> to vector<16x256xbf16>
    %c256 = arith.constant 256 : index
    %c0_10 = arith.constant 0 : index
    %13 = vector.load %arg3[%c256, %c0_10] : memref<768x384xbf16, #tpu.memory_space<vmem>>, vector<256x384xbf16>
    %cst_11 = arith.constant dense<0.000000e+00> : vector<16x384xf32>
    %14 = tpu.matmul %12, %13, %cst_11 {dimension_numbers = #tpu.dot_dimension_numbers<[1], [0], [0], [1], [0, 0, 1, 1], [], []>} : vector<16x256xbf16>, vector<256x384xbf16>, vector<16x384xf32> -> vector<16x384xf32>
    %15 = arith.addf %9, %14 : vector<16x384xf32>
    %16 = arith.truncf %11 : vector<16x256xf32> to vector<16x256xbf16>
    %cst_12 = arith.constant dense<0.000000e+00> : vector<16x256xf32>
    %17 = tpu.matmul %0, %16, %cst_12 {dimension_numbers = #tpu.dot_dimension_numbers<[1], [0], [0], [1], [0, 0, 1, 1], [], []>} : vector<16x16xbf16>, vector<16x256xbf16>, vector<16x256xf32> -> vector<16x256xf32>
    %cst_13 = arith.constant 2.000000e+00 : f32
    %18 = vector.broadcast %cst_13 : f32 to vector<16x256xf32>
    %19 = arith.mulf %18, %17 : vector<16x256xf32>
    %20 = arith.subf %19, %3 : vector<16x256xf32>
    %21 = arith.truncf %20 : vector<16x256xf32> to vector<16x256xbf16>
    %c512 = arith.constant 512 : index
    %c0_14 = arith.constant 0 : index
    %22 = vector.load %arg3[%c512, %c0_14] : memref<768x384xbf16, #tpu.memory_space<vmem>>, vector<256x384xbf16>
    %cst_15 = arith.constant dense<0.000000e+00> : vector<16x384xf32>
    %23 = tpu.matmul %21, %22, %cst_15 {dimension_numbers = #tpu.dot_dimension_numbers<[1], [0], [0], [1], [0, 0, 1, 1], [], []>} : vector<16x256xbf16>, vector<256x384xbf16>, vector<16x384xf32> -> vector<16x384xf32>
    %24 = arith.addf %15, %23 : vector<16x384xf32>
    %25 = vector.extract_strided_slice %24 {offsets = [0, 0], sizes = [16, 128], strides = [1, 1]} : vector<16x384xf32> to vector<16x128xf32>
    %26 = arith.negf %25 : vector<16x128xf32>
    %27 = math.exp %26 : vector<16x128xf32>
    %cst_16 = arith.constant 1.000000e+00 : f32
    %28 = vector.broadcast %cst_16 : f32 to vector<16x128xf32>
    %29 = arith.addf %28, %27 : vector<16x128xf32>
    %30 = arith.divf %28, %29 : vector<16x128xf32>
    %31 = vector.extract_strided_slice %24 {offsets = [0, 128], sizes = [16, 128], strides = [1, 1]} : vector<16x384xf32> to vector<16x128xf32>
    %32 = arith.negf %31 : vector<16x128xf32>
    %33 = math.exp %32 : vector<16x128xf32>
    %cst_17 = arith.constant 1.000000e+00 : f32
    %34 = vector.broadcast %cst_17 : f32 to vector<16x128xf32>
    %35 = arith.addf %34, %33 : vector<16x128xf32>
    %36 = arith.divf %34, %35 : vector<16x128xf32>
    %37 = arith.mulf %2, %36 : vector<16x128xf32>
    %38 = vector.extract_strided_slice %24 {offsets = [0, 256], sizes = [16, 128], strides = [1, 1]} : vector<16x384xf32> to vector<16x128xf32>
    %39 = arith.truncf %37 : vector<16x128xf32> to vector<16x128xbf16>
    %c0_18 = arith.constant 0 : index
    %c0_19 = arith.constant 0 : index
    %40 = vector.load %arg4[%c0_18, %c0_19] : memref<384x128xbf16, #tpu.memory_space<vmem>>, vector<128x128xbf16>
    %cst_20 = arith.constant dense<0.000000e+00> : vector<16x128xf32>
    %41 = tpu.matmul %39, %40, %cst_20 {dimension_numbers = #tpu.dot_dimension_numbers<[1], [0], [0], [1], [0, 0, 1, 1], [], []>} : vector<16x128xbf16>, vector<128x128xbf16>, vector<16x128xf32> -> vector<16x128xf32>
    %42 = arith.addf %38, %41 : vector<16x128xf32>
    %43 = arith.truncf %37 : vector<16x128xf32> to vector<16x128xbf16>
    %cst_21 = arith.constant dense<0.000000e+00> : vector<16x128xf32>
    %44 = tpu.matmul %0, %43, %cst_21 {dimension_numbers = #tpu.dot_dimension_numbers<[1], [0], [0], [1], [0, 0, 1, 1], [], []>} : vector<16x16xbf16>, vector<16x128xbf16>, vector<16x128xf32> -> vector<16x128xf32>
    %45 = arith.truncf %44 : vector<16x128xf32> to vector<16x128xbf16>
    %c128 = arith.constant 128 : index
    %c0_22 = arith.constant 0 : index
    %46 = vector.load %arg4[%c128, %c0_22] : memref<384x128xbf16, #tpu.memory_space<vmem>>, vector<128x128xbf16>
    %cst_23 = arith.constant dense<0.000000e+00> : vector<16x128xf32>
    %47 = tpu.matmul %45, %46, %cst_23 {dimension_numbers = #tpu.dot_dimension_numbers<[1], [0], [0], [1], [0, 0, 1, 1], [], []>} : vector<16x128xbf16>, vector<128x128xbf16>, vector<16x128xf32> -> vector<16x128xf32>
    %48 = arith.addf %42, %47 : vector<16x128xf32>
    %49 = arith.truncf %44 : vector<16x128xf32> to vector<16x128xbf16>
    %cst_24 = arith.constant dense<0.000000e+00> : vector<16x128xf32>
    %50 = tpu.matmul %0, %49, %cst_24 {dimension_numbers = #tpu.dot_dimension_numbers<[1], [0], [0], [1], [0, 0, 1, 1], [], []>} : vector<16x16xbf16>, vector<16x128xbf16>, vector<16x128xf32> -> vector<16x128xf32>
    %cst_25 = arith.constant 2.000000e+00 : f32
    %51 = vector.broadcast %cst_25 : f32 to vector<16x128xf32>
    %52 = arith.mulf %51, %50 : vector<16x128xf32>
    %53 = arith.subf %52, %37 : vector<16x128xf32>
    %54 = arith.truncf %53 : vector<16x128xf32> to vector<16x128xbf16>
    %c256_26 = arith.constant 256 : index
    %c0_27 = arith.constant 0 : index
    %55 = vector.load %arg4[%c256_26, %c0_27] : memref<384x128xbf16, #tpu.memory_space<vmem>>, vector<128x128xbf16>
    %cst_28 = arith.constant dense<0.000000e+00> : vector<16x128xf32>
    %56 = tpu.matmul %54, %55, %cst_28 {dimension_numbers = #tpu.dot_dimension_numbers<[1], [0], [0], [1], [0, 0, 1, 1], [], []>} : vector<16x128xbf16>, vector<128x128xbf16>, vector<16x128xf32> -> vector<16x128xf32>
    %57 = arith.addf %48, %56 : vector<16x128xf32>
    %58 = math.tanh %57 : vector<16x128xf32>
    %59 = arith.addf %58, %57 : vector<16x128xf32>
    %60 = arith.mulf %30, %2 : vector<16x128xf32>
    %cst_29 = arith.constant 1.000000e+00 : f32
    %61 = vector.broadcast %cst_29 : f32 to vector<16x128xf32>
    %62 = arith.subf %61, %30 : vector<16x128xf32>
    %63 = arith.mulf %62, %59 : vector<16x128xf32>
    %64 = arith.addf %60, %63 : vector<16x128xf32>
    %c0_30 = arith.constant 0 : index
    %c0_31 = arith.constant 0 : index
    %65 = vector.load %arg6[%c0_30, %c0_31] : memref<16x128xf32, #tpu.memory_space<vmem>>, vector<16x128xf32>
    tpu.vector_store %arg6[%c0_30, %c0_31], %64 {strides = array<i32>} : memref<16x128xf32, #tpu.memory_space<vmem>>, vector<16x128xf32>,
    return
  }
}

</mosaic_0001>

<bundles_post_ra>
// kernel: tpu_custom_call.1
= control target key start
LH: loop header
LB: loop body
LE: loop exit
PB: predicated region body
PF: predicated region fallthrough
CT: control target
= control target key end

     0   :  { %11 = vsyncpa [#allocation3], 0  ;;  %s2857_s0 = inlined_call_operand.hbm [shape: bf16[16,16], index: 0, kind: input, shape index: {}]   ;;  %s2858_s1 = inlined_call_operand.hbm [shape: f32[16,128], index: 1, kind: input, shape index: {}]   ;;  %s2859_s2 = inlined_call_operand.hbm [shape: f32[16,128], index: 2, kind: input, shape index: {}]   ;;  %s2860_s3 = inlined_call_operand.hbm [shape: bf16[768,384], index: 3, kind: input, shape index: {}]   ;;  %s2861_s4 = inlined_call_operand.hbm [shape: bf16[384,128], index: 4, kind: input, shape index: {}]   ;;  %s2862_s5 = inlined_call_operand.vmem [shape: f32[1,384], index: 5, kind: input, shape index: {}]   ;;  %s2863_s6 = inlined_call_operand.hbm [shape: f32[16,128], index: 6, kind: output, shape index: {}]  }
   0x1   :  { %12 = vsyncpa [#allocation6], 0 }
   0x2   :  { %13 = vsyncpa [#allocation9], 0 }
   0x3   :  { %14 = vsyncpa [#allocation4], 0  ;;  %s2654_s21 = smov [#allocation5]  }
   0x4   :  { %s32_s22 = sshll.u32 %s2654_s21, 4  ;;  %s33_s22 = int_to_ptr.vmem [resolvable:$true] %s32_s22 }
   0x5   :  { %s2534_s23 = scalar_lea.vmem %s33_s22, 256  ;;  %p2539_p1 = scmp.lt.s32.totalorder %s33_s22, %s33_s22 }
   0x6   :  { %p2535_p0 = scmp.ne.s32.totalorder %s33_s22, %s2534_s23  ;;  %p2540_p2 = scmp.lt.s32.totalorder %s2534_s23, %s2534_s23 }
   0x8   :  { %p2541_p3 = por %p2540_p2, %p2539_p1 }
   0xa   :  { %p2542_p4 = pnand %p2541_p3, %p2535_p0 }
   0xc   :  { %2545 = shalt.err (!%p2542_p4)
}
   0xd   :  { %s2655_s24 = smov 128   ;;  %s2656_s25 = smov 8  }
   0xe   :  { %38 = dma.hbm_to_vmem [thread:$0]  %s2858_s1, 256, %s33_s22, [#allocation6], %s2655_s24, %s2655_s24, %s2656_s25  }
   0xf   :  { %s2657_s28 = smov [#allocation8]  }
  0x10   :  { %s56_s29 = sshll.u32 %s2657_s28, 4  ;;  %s57_s29 = int_to_ptr.vmem [resolvable:$true] %s56_s29 }
  0x11   :  { %s2554_s30 = scalar_lea.vmem %s57_s29, 18432  ;;  %p2559_p6 = scmp.lt.s32.totalorder %s57_s29, %s57_s29 }
  0x12   :  { %p2555_p5 = scmp.ne.s32.totalorder %s57_s29, %s2554_s30  ;;  %p2560_p7 = scmp.lt.s32.totalorder %s2554_s30, %s2554_s30 }
  0x14   :  { %p2561_p8 = por %p2560_p7, %p2559_p6 }
  0x16   :  { %p2562_p9 = pnand %p2561_p8, %p2555_p5 }
  0x18   :  { %2565 = shalt.err (!%p2562_p9)
}
  0x19   :  { %s2658_s7 = smov 192   ;;  %s2659_s8 = smov 12  }
  0x1a   :  { %62 = dma.hbm_to_vmem [thread:$0]  %s2860_s3, 18432, %s57_s29, [#allocation9], %s2658_s7, %s2658_s7, %s2659_s8  }
  0x1b   :  { %s2660_s11 = smov [#allocation2]  }
  0x1c   :  { %s20_s12 = sshll.u32 %s2660_s11, 4  ;;  %s21_s12 = int_to_ptr.vmem [resolvable:$true] %s20_s12 }
  0x1d   :  { %s2574_s1 = scalar_lea.vmem %s21_s12, 128  ;;  %p2579_p11 = scmp.lt.s32.totalorder %s21_s12, %s21_s12 }
  0x1e   :  { %p2575_p10 = scmp.ne.s32.totalorder %s21_s12, %s2574_s1  ;;  %p2580_p12 = scmp.lt.s32.totalorder %s2574_s1, %s2574_s1 }
  0x20   :  { %p2581_p13 = por %p2580_p12, %p2579_p11 }
  0x22   :  { %p2582_p0 = pnand %p2581_p13, %p2575_p10 }
  0x24   :  { %2585 = shalt.err (!%p2582_p0)
}
  0x25   :  { %s2661_s13 = smov 64   ;;  %s2662_s14 = smov 4  }
  0x26   :  { %26 = dma.hbm_to_vmem [thread:$0]  %s2857_s0, 128, %s21_s12, [#allocation3], %s2661_s13, %s2661_s13, %s2662_s14  }
  0x27   :  { %s2663_s17 = smov [#allocation7]   ;;  %s2664_s3 = smov [#allocation10]  }
  0x28   :  { %s44_s18 = sshll.u32 %s2663_s17, 4  ;;  %s68_s19 = sshll.u32 %s2664_s3, 4  ;;  %s45_s18 = int_to_ptr.vmem [resolvable:$true] %s44_s18  ;;  %s69_s19 = int_to_ptr.vmem [resolvable:$true] %s68_s19 }
  0x29   :  { %s2594_s20 = scalar_lea.vmem %s45_s18, 256  ;;  %p2599_p2 = scmp.lt.s32.totalorder %s45_s18, %s45_s18 }
  0x2a   :  { %p2595_p1 = scmp.ne.s32.totalorder %s45_s18, %s2594_s20  ;;  %p2600_p3 = scmp.lt.s32.totalorder %s2594_s20, %s2594_s20 }
  0x2c   :  { %p2601_p4 = por %p2600_p3, %p2599_p2 }
  0x2e   :  { %p2602_p5 = pnand %p2601_p4, %p2595_p1 }
  0x30   :  { %2605 = shalt.err (!%p2602_p5)
}
  0x31   :  { %50 = dma.hbm_to_vmem [thread:$0]  %s2859_s2, 256, %s45_s18, [#allocation6], %s2655_s24, %s2655_s24, %s2656_s25  }
  0x32   :  { %s2614_s0 = scalar_lea.vmem %s69_s19, 3072  ;;  %p2619_p7 = scmp.lt.s32.totalorder %s69_s19, %s69_s19 }
  0x33   :  { %p2615_p6 = scmp.ne.s32.totalorder %s69_s19, %s2614_s0  ;;  %p2620_p8 = scmp.lt.s32.totalorder %s2614_s0, %s2614_s0 }
  0x35   :  { %p2621_p9 = por %p2620_p8, %p2619_p7 }
  0x37   :  { %p2622_p10 = pnand %p2621_p9, %p2615_p6 }
  0x39   :  { %2625 = shalt.err (!%p2622_p10)
}
  0x3a   :  { %74 = dma.hbm_to_vmem [thread:$0]  %s2861_s4, 3072, %s69_s19, [#allocation9], %s2661_s13, %s2661_s13, %s2662_s14  }
  0x3b   :  { %2646 = dma.done.wait [#allocation3], 128  }
  0x3c   :  { %2647 = vsyncadd [#allocation3], 4294967168 }
  0x3d   :  { %2648 = dma.done.wait [#allocation6], 512  }
  0x3e   :  { %2649 = vsyncadd [#allocation6], 4294966784 }
  0x3f   :  { %2650 = dma.done.wait [#allocation9], 21504  }
  0x40   :  { %2651 = vsyncadd [#allocation9], 4294945792  ;;  %v2285_v0 = vld [vmem:[#allocation8 + $0x170] ss:$12 sps:$4 sm:$0xff]   ;;  %v2287_v2 = vld [vmem:[#allocation8 + $0x158] ss:$12 sps:$4 sm:$0xff]  }
  0x41   :  { %v2286_v1 = vld [vmem:[#allocation8 + $0xb0] ss:$12 sps:$4 sm:$0xff]   ;;  %2101 = vmatprep.subr.bf16.mxu1 %v2285_v0  ;;  %v2288_v3 = vld [vmem:[#allocation8 + $0x98] ss:$12 sps:$4 sm:$0xff]   ;;  %v2289_v4 = vld [vmem:[#allocation8 + $0x140] ss:$12 sps:$4 sm:$0xff]  }
  0x42   :  { %2102 = vmatpush3.bf16.msra.mxu1 %v2286_v1  ;;  %v2290_v5 = vld [vmem:[#allocation8 + $0x80] ss:$12 sps:$4 sm:$0xff]   ;;  %v2291_v6 = vld [vmem:[#allocation8 + $0x128] ss:$12 sps:$4 sm:$0xff]   ;;  %v2293_v8 = vld [vmem:[#allocation8 + $0x110] ss:$12 sps:$4 sm:$0xff]  }
  0x43   :  { %2103 = vmatprep.subr.bf16.mxu1 %v2287_v2  ;;  %v2292_v7 = vld [vmem:[#allocation8 + $0x68] ss:$12 sps:$4 sm:$0xff]   ;;  %v2294_v9 = vld [vmem:[#allocation8 + $0x50] ss:$12 sps:$4 sm:$0xff]   ;;  %v2295_v10 = vld [vmem:[#allocation8 + $0xf8] ss:$12 sps:$4 sm:$0xff]  }
  0x44   :  { %v97_v11 = vld [vmem:[#allocation7] sm:$0xff]  ;;  %v98_v12 = vld [vmem:[#allocation7 + $0x8] sm:$0xff]  ;;  %v2297_v17 = vld [vmem:[#allocation8 + $0xe0] ss:$12 sps:$4 sm:$0xff]   ;;  %v2665_v33 = vmov 0   ;;  %vm533_vm0 = vcmask 130048  }
  0x45   :  { %v101_v13 = vpack.c.bf16 %v98_v12, %v97_v11  ;;  %v2296_v14 = vld [vmem:[#allocation8 + $0x38] ss:$12 sps:$4 sm:$0xff]   ;;  %v2304_v16 = vld [vmem:[#allocation8 + $0xa8] ss:$12 sps:$4 sm:$0xff]   ;;  %v2307_v19 = vld [vmem:[#allocation8 + $0x90] ss:$12 sps:$4 sm:$0xff]  }
  0x46   :  { %2104 = vmatpush3.bf16.msra.mxu1 %v2288_v3  ;;  %v2302_v15 = vld [vmem:[#allocation8 + $0xac] ss:$12 sps:$4 sm:$0xff]   ;;  %v2305_v18 = vld [vmem:[#allocation8 + $0x94] ss:$12 sps:$4 sm:$0xff]   ;;  %v2308_v21 = vld [vmem:[#allocation8 + $0x7c] ss:$12 sps:$4 sm:$0xff]  }
  0x47   :  { %2105 = vmatprep.subr.bf16.mxu1 %v2289_v4  ;;  %497 = vmatprep.mubr.bf16.mxu1 %v101_v13  ;;  %v2298_v20 = vld [vmem:[#allocation8 + $0x20] ss:$12 sps:$4 sm:$0xff]   ;;  %v2299_v22 = vld [vmem:[#allocation8 + $0xc8] ss:$12 sps:$4 sm:$0xff]   ;;  %v2310_v25 = vld [vmem:[#allocation8 + $0x78] ss:$12 sps:$4 sm:$0xff]  }
  0x48   :  { %454 = vmatprep.mubr.bf16.mxu0 %v101_v13  ;;  %422 = vmatprep.subr.bf16.mxu0 %v2302_v15  ;;  %v2300_v23 = vld [vmem:[#allocation8 + $0x8] ss:$12 sps:$4 sm:$0xff]   ;;  %v95_v24 = vld [vmem:[#allocation5] sm:$0xff]  ;;  %v2314_v30 = vld [vmem:[#allocation8 + $0x4c] ss:$12 sps:$4 sm:$0xff]   ;;  %vm2667_vm1 = vmmov 0  }
  0x49   :  { %423 = vmatpush1.bf16.msra.mxu0 %v2304_v16  ;;  %v2725_v26 = vld [vmem:[#allocation5 + $0x8] sm:$0xff]  ;;  %v2311_v27 = vld [vmem:[#allocation8 + $0x64] ss:$12 sps:$4 sm:$0xff]   ;;  %v2317_v34 = vld [vmem:[#allocation8 + $0x34] ss:$12 sps:$4 sm:$0xff]  }
  0x4a   :  { %2106 = vmatpush3.bf16.msra.mxu1 %v2290_v5  ;;  %424 = vmatprep.subr.bf16.mxu0 %v2305_v18  ;;  %v2728_v28 = vpack.c.bf16 %v2725_v26, %v95_v24  ;;  %v2313_v29 = vld [vmem:[#allocation8 + $0x60] ss:$12 sps:$4 sm:$0xff]   ;;  %v2316_v32 = vld [vmem:[#allocation8 + $0x48] ss:$12 sps:$4 sm:$0xff]   ;;  %v2733_v35 = vld [vmem:[#allocation2] sm:$0xff]   ;;  %v507_v24 = vlaneseq }
  0x4b   :  { %2107 = vmatprep.subr.bf16.mxu1 %v2291_v6  ;;  %v2328_v31 = vld [vmem:[#allocation8 + $0x22c] ss:$12 sps:$4 sm:$0xff]   ;;  %v2319_v36 = vld [vmem:[#allocation8 + $0x30] ss:$12 sps:$4 sm:$0xff]   ;;  %v2326_v38 = vld [vmem:[#allocation8 + $0x228] ss:$12 sps:$4 sm:$0xff]  }
  0x4c   :  { %v2320_v37 = vld [vmem:[#allocation8 + $0x1c] ss:$12 sps:$4 sm:$0xff]   ;;  %v2334_v39 = vld [vmem:[#allocation8 + $0x214] ss:$12 sps:$4 sm:$0xff]   ;;  %v2322_v40 = vld [vmem:[#allocation8 + $0x18] ss:$12 sps:$4 sm:$0xff]  }
  0x4d   :  { %425 = vmatpush1.bf16.msra.mxu0 %v2307_v19  ;;  %v2323_v41 = vld [vmem:[#allocation8 + $0x4] ss:$12 sps:$4 sm:$0xff]   ;;  %v2340_v43 = vld [vmem:[#allocation8 + $0x1fc] ss:$12 sps:$4 sm:$0xff]   ;;  %v2325_v44 = vld [vmem:[#allocation8] ss:$12 sps:$4 sm:$0xff]  }
  0x4e   :  { %2108 = vmatpush3.bf16.msra.mxu1 %v2292_v7  ;;  %426 = vmatprep.subr.bf16.mxu0 %v2308_v21  ;;  %v2332_v42 = vld [vmem:[#allocation8 + $0x210] ss:$12 sps:$4 sm:$0xff]   ;;  %v2329_v45 = vld [vmem:[#allocation8 + $0x16c] ss:$12 sps:$4 sm:$0xff]   ;;  %v2331_v48 = vld [vmem:[#allocation8 + $0x168] ss:$12 sps:$4 sm:$0xff]  }
  0x4f   :  { %2109 = vmatprep.subr.bf16.mxu1 %v2293_v8  ;;  %v2338_v46 = vld [vmem:[#allocation8 + $0x1f8] ss:$12 sps:$4 sm:$0xff]   ;;  %v2335_v49 = vld [vmem:[#allocation8 + $0x154] ss:$12 sps:$4 sm:$0xff]   ;;  %v2337_v52 = vld [vmem:[#allocation8 + $0x150] ss:$12 sps:$4 sm:$0xff]  }
  0x50   :  { %v2346_v47 = vld [vmem:[#allocation8 + $0x1e4] ss:$12 sps:$4 sm:$0xff]   ;;  %v2344_v50 = vld [vmem:[#allocation8 + $0x1e0] ss:$12 sps:$4 sm:$0xff]   ;;  %v2341_v53 = vld [vmem:[#allocation8 + $0x13c] ss:$12 sps:$4 sm:$0xff]  }
  0x51   :  { %427 = vmatpush1.bf16.msra.mxu0 %v2310_v25  ;;  %v2352_v51 = vld [vmem:[#allocation8 + $0x1cc] ss:$12 sps:$4 sm:$0xff]   ;;  %v2350_v54 = vld [vmem:[#allocation8 + $0x1c8] ss:$12 sps:$4 sm:$0xff]   ;;  %v2347_v57 = vld [vmem:[#allocation8 + $0x124] ss:$12 sps:$4 sm:$0xff]  }
  0x52   :  { %2110 = vmatpush3.bf16.msra.mxu1 %v2294_v9  ;;  %428 = vmatprep.subr.bf16.mxu0 %v2311_v27  ;;  %v2358_v55 = vld [vmem:[#allocation8 + $0x1b4] ss:$12 sps:$4 sm:$0xff]   ;;  %v2343_v56 = vld [vmem:[#allocation8 + $0x138] ss:$12 sps:$4 sm:$0xff]   ;;  %v2356_v58 = vld [vmem:[#allocation8 + $0x1b0] ss:$12 sps:$4 sm:$0xff]  }
  0x53   :  { %2111 = vmatprep.subr.bf16.mxu1 %v2295_v10  ;;  %v2364_v59 = vld [vmem:[#allocation8 + $0x19c] ss:$12 sps:$4 sm:$0xff]   ;;  %v2349_v60 = vld [vmem:[#allocation8 + $0x120] ss:$12 sps:$4 sm:$0xff]   ;;  %v2362_v62 = vld [vmem:[#allocation8 + $0x198] ss:$12 sps:$4 sm:$0xff]  }
  0x54   :  { %v2353_v61 = vld [vmem:[#allocation8 + $0x10c] ss:$12 sps:$4 sm:$0xff]   ;;  %v2370_v63 = vld [vmem:[#allocation8 + $0x184] ss:$12 sps:$4 sm:$0xff]   ;;  %v2355_v0 = vld [vmem:[#allocation8 + $0x108] ss:$12 sps:$4 sm:$0xff]  }
  0x55   :  { %429 = vmatpush1.bf16.msra.mxu0 %v2313_v29  ;;  %v2359_v1 = vld [vmem:[#allocation8 + $0xf4] ss:$12 sps:$4 sm:$0xff]   ;;  %v2376_v3 = vld [vmem:[#allocation8 + $0x2ec] ss:$12 sps:$4 sm:$0xff]   ;;  %v2361_v4 = vld [vmem:[#allocation8 + $0xf0] ss:$12 sps:$4 sm:$0xff]  }
  0x56   :  { %2112 = vmatpush3.bf16.msra.mxu1 %v2296_v14  ;;  %430 = vmatprep.subr.bf16.mxu0 %v2314_v30  ;;  %v2368_v2 = vld [vmem:[#allocation8 + $0x180] ss:$12 sps:$4 sm:$0xff]   ;;  %v2365_v5 = vld [vmem:[#allocation8 + $0xdc] ss:$12 sps:$4 sm:$0xff]   ;;  %v2367_v8 = vld [vmem:[#allocation8 + $0xd8] ss:$12 sps:$4 sm:$0xff]  }
  0x57   :  { %2113 = vmatprep.subr.bf16.mxu1 %v2297_v17  ;;  %v2374_v6 = vld [vmem:[#allocation8 + $0x2e8] ss:$12 sps:$4 sm:$0xff]   ;;  %v2371_v9 = vld [vmem:[#allocation8 + $0xc4] ss:$12 sps:$4 sm:$0xff]   ;;  %v2373_v12 = vld [vmem:[#allocation8 + $0xc0] ss:$12 sps:$4 sm:$0xff]  }
  0x58   :  { %v2381_v7 = vld [vmem:[#allocation8 + $0x2d4] ss:$12 sps:$4 sm:$0xff]   ;;  %v2379_v10 = vld [vmem:[#allocation8 + $0x2d0] ss:$12 sps:$4 sm:$0xff]   ;;  %v2384_v14 = vld [vmem:[#allocation8 + $0x2b8] ss:$12 sps:$4 sm:$0xff]  }
  0x59   :  { %431 = vmatpush1.bf16.msra.mxu0 %v2316_v32  ;;  %v2386_v11 = vld [vmem:[#allocation8 + $0x2bc] ss:$12 sps:$4 sm:$0xff]   ;;  %v2391_v15 = vld [vmem:[#allocation8 + $0x2a4] ss:$12 sps:$4 sm:$0xff]   ;;  %v2389_v18 = vld [vmem:[#allocation8 + $0x2a0] ss:$12 sps:$4 sm:$0xff]  }
  0x5a   :  { %2114 = vmatpush3.bf16.msra.mxu1 %v2298_v20  ;;  %432 = vmatprep.subr.bf16.mxu0 %v2317_v34  ;;  %v2378_v16 = vld [vmem:[#allocation8 + $0x230] ss:$12 sps:$4 sm:$0xff]   ;;  %v2382_v17 = vld [vmem:[#allocation8 + $0x2d8] ss:$12 sps:$4 sm:$0xff]   ;;  %v2387_v20 = vld [vmem:[#allocation8 + $0x2c0] ss:$12 sps:$4 sm:$0xff]  }
  0x5b   :  { %2115 = vmatprep.subr.bf16.mxu1 %v2299_v22  ;;  %v2383_v19 = vld [vmem:[#allocation8 + $0x218] ss:$12 sps:$4 sm:$0xff]   ;;  %v2388_v21 = vld [vmem:[#allocation8 + $0x200] ss:$12 sps:$4 sm:$0xff]   ;;  %v2392_v22 = vld [vmem:[#allocation8 + $0x2a8] ss:$12 sps:$4 sm:$0xff]  }
  0x5c   :  { %v2396_v25 = vld [vmem:[#allocation8 + $0x28c] ss:$12 sps:$4 sm:$0xff]   ;;  %v2738_v27 = vshrl.u32 %v507_v24, 7  ;;  %v2394_v29 = vld [vmem:[#allocation8 + $0x288] ss:$12 sps:$4 sm:$0xff]  }
  0x5d   :  { %433 = vmatpush1.bf16.msra.mxu0 %v2319_v36  ;;  %v2397_v30 = vld [vmem:[#allocation8 + $0x290] ss:$12 sps:$4 sm:$0xff]   ;;  %v2401_v36 = vld [vmem:[#allocation8 + $0x274] ss:$12 sps:$4 sm:$0xff]  }
  0x5e   :  { %2116 = vmatpush3.bf16.msra.mxu1 %v2300_v23  ;;  %434 = vmatprep.subr.bf16.mxu0 %v2320_v37  ;;  %v2393_v23 = vld [vmem:[#allocation8 + $0x1e8] ss:$12 sps:$4 sm:$0xff]   ;;  %v2398_v32 = vld [vmem:[#allocation8 + $0x1d0] ss:$12 sps:$4 sm:$0xff]  }
  0x5f   :  { %551 = vmatprep.subr.bf16.mxu1 %v101_v13  ;;  %v2377_v13 = vld [vmem:[#allocation8 + $0x2f0] ss:$12 sps:$4 sm:$0xff]  }
  0x60   :  { %v2399_v37 = vld [vmem:[#allocation8 + $0x270] ss:$12 sps:$4 sm:$0xff]  }
  0x61   :  { %498 = vmatmul.mubr.bf16.vlgmr.msra.gmra.mxu1 %v2728_v28  ;;  %435 = vmatpush1.bf16.msra.mxu0 %v2322_v40  ;;  %v2406_v40 = vld [vmem:[#allocation8 + $0x25c] ss:$12 sps:$4 sm:$0xff]  }
  0x62   :  { %552 = vmatpush1.bf16.msra.mxu1 %v2728_v28  ;;  %569 = vmatprep.mubr.bf16.mxu1 %v2665_v33 }
  0x63   :  { %902 = vmatprep.subr.bf16.mxu1 %v2328_v31  ;;  %436 = vmatprep.subr.bf16.mxu0 %v2323_v41  ;;  %v517_v31 = vsub.s32 2, %v2738_v27  ;;  %v2404_v41 = vld [vmem:[#allocation8 + $0x258] ss:$12 sps:$4 sm:$0xff]  }
  0x65   :  { %437 = vmatpush1.bf16.msra.mxu0 %v2325_v44  ;;  %v2411_v44 = vld [vmem:[#allocation8 + $0x244] ss:$12 sps:$4 sm:$0xff]  }
  0x66   :  { %438 = vmatprep.subr.bf16.mxu0 %v2329_v45  ;;  %v2409_v45 = vld [vmem:[#allocation8 + $0x240] ss:$12 sps:$4 sm:$0xff]  }
  0x69   :  { %1973 = vmatmul.mubr.msk.bf16.vlgmr.msra.gmra.mxu1 %vm533_vm0, %v2733_v35  ;;  %439 = vmatpush2.bf16.msra.mxu0 %v2331_v48  ;;  %v2416_v48 = vld [vmem:[#allocation8 + $0x3ac] ss:$12 sps:$4 sm:$0xff]  }
  0x6a   :  { %903 = vmatpush1.bf16.msra.mxu1 %v2326_v38  ;;  %440 = vmatprep.subr.bf16.mxu0 %v2335_v49  ;;  %v2402_v38 = vld [vmem:[#allocation8 + $0x278] ss:$12 sps:$4 sm:$0xff]   ;;  %v509_v49 = vsub.s32 0, %v2738_v27 }
  0x6b   :  { %904 = vmatprep.subr.bf16.mxu1 %v2334_v39  ;;  %v2403_v39 = vld [vmem:[#allocation8 + $0x1b8] ss:$12 sps:$4 sm:$0xff]  }
  0x6d   :  { %441 = vmatpush2.bf16.msra.mxu0 %v2337_v52 }
  0x6e   :  { %905 = vmatpush1.bf16.msra.mxu1 %v2332_v42  ;;  %442 = vmatprep.subr.bf16.mxu0 %v2341_v53  ;;  %v2407_v42 = vld [vmem:[#allocation8 + $0x260] ss:$12 sps:$4 sm:$0xff]  }
  0x6f   :  { %906 = vmatprep.subr.bf16.mxu1 %v2340_v43  ;;  %v2408_v43 = vld [vmem:[#allocation8 + $0x1a0] ss:$12 sps:$4 sm:$0xff]  }
  0x71   :  { %443 = vmatpush2.bf16.msra.mxu0 %v2343_v56 }
  0x72   :  { %907 = vmatpush1.bf16.msra.mxu1 %v2338_v46  ;;  %444 = vmatprep.subr.bf16.mxu0 %v2347_v57  ;;  %v2412_v46 = vld [vmem:[#allocation8 + $0x248] ss:$12 sps:$4 sm:$0xff]  }
  0x73   :  { %908 = vmatprep.subr.bf16.mxu1 %v2346_v47  ;;  %v2413_v47 = vld [vmem:[#allocation8 + $0x188] ss:$12 sps:$4 sm:$0xff]  }
  0x75   :  { %445 = vmatpush2.bf16.msra.mxu0 %v2349_v60 }
  0x76   :  { %909 = vmatpush1.bf16.msra.mxu1 %v2344_v50  ;;  %446 = vmatprep.subr.bf16.mxu0 %v2353_v61 }
  0x77   :  { %910 = vmatprep.subr.bf16.mxu1 %v2352_v51 }
  0x79   :  { %447 = vmatpush2.bf16.msra.mxu0 %v2355_v0 }
  0x7a   :  { %911 = vmatpush1.bf16.msra.mxu1 %v2350_v54  ;;  %448 = vmatprep.subr.bf16.mxu0 %v2359_v1  ;;  %v2414_v1 = vld [vmem:[#allocation8 + $0x3a8] ss:$12 sps:$4 sm:$0xff]  }
  0x7b   :  { %912 = vmatprep.subr.bf16.mxu1 %v2358_v55 }
  0x7d   :  { %449 = vmatpush2.bf16.msra.mxu0 %v2361_v4  ;;  %v2417_v4 = vld [vmem:[#allocation8 + $0x390] ss:$12 sps:$4 sm:$0xff]  }
  0x7e   :  { %913 = vmatpush1.bf16.msra.mxu1 %v2356_v58  ;;  %450 = vmatprep.subr.bf16.mxu0 %v2365_v5  ;;  %v2422_v5 = vld [vmem:[#allocation8 + $0x37c] ss:$12 sps:$4 sm:$0xff]  }
  0x7f   :  { %914 = vmatprep.subr.bf16.mxu1 %v2364_v59 }
  0x81   :  { %451 = vmatpush2.bf16.msra.mxu0 %v2367_v8  ;;  %v2446_v8 = vld [vmem:[#allocation8 + $0x458] ss:$12 sps:$4 sm:$0xff]  }
  0x82   :  { %915 = vmatpush1.bf16.msra.mxu1 %v2362_v62  ;;  %452 = vmatprep.subr.bf16.mxu0 %v2371_v9  ;;  %v2425_v9 = vld [vmem:[#allocation8 + $0x364] ss:$12 sps:$4 sm:$0xff]  }
  0x83   :  { %916 = vmatprep.subr.bf16.mxu1 %v2370_v63 }
  0x85   :  { %453 = vmatpush2.bf16.msra.mxu0 %v2373_v12  ;;  %v2428_v12 = vld [vmem:[#allocation8 + $0x34c] ss:$12 sps:$4 sm:$0xff]  }
  0x86   :  { %917 = vmatpush1.bf16.msra.mxu1 %v2368_v2  ;;  %2123 = vmatprep.subr.bf16.mxu0 %v2377_v13  ;;  %v2419_v2 = vld [vmem:[#allocation8 + $0x394] ss:$12 sps:$4 sm:$0xff]  }
  0x87   :  { %918 = vmatprep.subr.bf16.mxu1 %v2376_v3  ;;  %v2441_v3 = vld [vmem:[#allocation8 + $0x470] ss:$12 sps:$4 sm:$0xff]   ;;  %v2452_v13 = vld [vmem:[#allocation8 + $0x380] ss:$12 sps:$4 sm:$0xff]  }
  0x88   :  { %455 = vmatmul.mubr.bf16.vlgmr.msra.gmra.mxu0 %v2728_v28  ;;  %v2743_v28 = vld [vmem:[%s2862_s5] sm:$0x7]  ;;  %s2668_s5 = smov [#allocation11]  }
  0x89   :  { %2124 = vmatpush3.bf16.msra.mxu0 %v2378_v16  ;;  %v518_v34 = vrot.slane %v2743_v28, %v517_v31  ;;  %v2749_v50 = vrot.slane %v2743_v28, %v509_v49  ;;  %v2429_v16 = vld [vmem:[#allocation8 + $0x330] ss:$12 sps:$4 sm:$0xff]   ;;  %v2471_v49 = vld [vmem:[#allocation8 + $0x3e0] ss:$12 sps:$4 sm:$0xff]   ;;  %s1910_s27 = sshll.u32 %s2668_s5, 4  ;;  %s1911_s27 = int_to_ptr.vmem [resolvable:$true] %s1910_s27 }
  0x8a   :  { %919 = vmatpush2.bf16.msra.mxu1 %v2374_v6  ;;  %2125 = vmatprep.subr.bf16.mxu0 %v2382_v17  ;;  %v2442_v6 = vld [vmem:[#allocation8 + $0x3b0] ss:$12 sps:$4 sm:$0xff]   ;;  %v2432_v17 = vld [vmem:[#allocation8 + $0x318] ss:$12 sps:$4 sm:$0xff]   ;;  %s2626_s28 = scalar_lea.vmem %s1911_s27, 256  ;;  %p2631_p12 = scmp.lt.s32.totalorder %s1911_s27, %s1911_s27 }
  0x8b   :  { %920 = vmatprep.subr.bf16.mxu1 %v2381_v7  ;;  %v2420_v7 = vld [vmem:[#allocation8 + $0x378] ss:$12 sps:$4 sm:$0xff]   ;;  %p2627_p11 = scmp.ne.s32.totalorder %s1911_s27, %s2626_s28  ;;  %p2632_p13 = scmp.lt.s32.totalorder %s2626_s28, %s2626_s28 }
  0x8d   :  { %2126 = vmatpush3.bf16.msra.mxu0 %v2383_v19  ;;  %v2435_v19 = vld [vmem:[#allocation8 + $0x300] ss:$12 sps:$4 sm:$0xff]   ;;  %p2633_p0 = por %p2632_p13, %p2631_p12 }
  0x8e   :  { %921 = vmatpush2.bf16.msra.mxu1 %v2379_v10  ;;  %2127 = vmatprep.subr.bf16.mxu0 %v2387_v20  ;;  %v2447_v10 = vld [vmem:[#allocation8 + $0x398] ss:$12 sps:$4 sm:$0xff]  }
  0x8f   :  { %922 = vmatprep.subr.bf16.mxu1 %v2386_v11  ;;  %v2423_v11 = vld [vmem:[#allocation8 + $0x360] ss:$12 sps:$4 sm:$0xff]   ;;  %p2634_p1 = pnand %p2633_p0, %p2627_p11 }
  0x90   :  { %v2440_v20 = vld [vmem:[#allocation8 + $0x46c] ss:$12 sps:$4 sm:$0xff]  }
  0x91   :  { %2128 = vmatpush3.bf16.msra.mxu0 %v2388_v21  ;;  %v2438_v21 = vld [vmem:[#allocation8 + $0x468] ss:$12 sps:$4 sm:$0xff]  }
  0x92   :  { %923 = vmatpush2.bf16.msra.mxu1 %v2384_v14  ;;  %2129 = vmatprep.subr.bf16.mxu0 %v2392_v22  ;;  %v2426_v14 = vld [vmem:[#allocation8 + $0x348] ss:$12 sps:$4 sm:$0xff]  }
  0x93   :  { %924 = vmatprep.subr.bf16.mxu1 %v2391_v15  ;;  %v2431_v15 = vld [vmem:[#allocation8 + $0x334] ss:$12 sps:$4 sm:$0xff]  }
  0x94   :  { %v2445_v22 = vld [vmem:[#allocation8 + $0x454] ss:$12 sps:$4 sm:$0xff]  }
  0x95   :  { %2130 = vmatpush3.bf16.msra.mxu0 %v2393_v23 }
  0x96   :  { %925 = vmatpush2.bf16.msra.mxu1 %v2389_v18  ;;  %2131 = vmatprep.subr.bf16.mxu0 %v2397_v30  ;;  %v2437_v18 = vld [vmem:[#allocation8 + $0x304] ss:$12 sps:$4 sm:$0xff]   ;;  %v2450_v30 = vld [vmem:[#allocation8 + $0x43c] ss:$12 sps:$4 sm:$0xff]  }
  0x97   :  { %926 = vmatprep.subr.bf16.mxu1 %v2396_v25  ;;  %v2443_v25 = vld [vmem:[#allocation8 + $0x450] ss:$12 sps:$4 sm:$0xff]  }
  0x99   :  { %2132 = vmatpush3.bf16.msra.mxu0 %v2398_v32 }
  0x9a   :  { %927 = vmatpush2.bf16.msra.mxu1 %v2394_v29  ;;  %2133 = vmatprep.subr.bf16.mxu0 %v2402_v38  ;;  %v2453_v38 = vld [vmem:[#allocation8 + $0x420] ss:$12 sps:$4 sm:$0xff]  }
  0x9b   :  { %928 = vmatprep.subr.bf16.mxu1 %v2401_v36  ;;  %v2455_v36 = vld [vmem:[#allocation8 + $0x424] ss:$12 sps:$4 sm:$0xff]  }
  0x9d   :  { %2134 = vmatpush3.bf16.msra.mxu0 %v2403_v39  ;;  %v2457_v39 = vld [vmem:[#allocation8 + $0x368] ss:$12 sps:$4 sm:$0xff]  }
  0x9e   :  { %929 = vmatpush2.bf16.msra.mxu1 %v2399_v37  ;;  %2135 = vmatprep.subr.bf16.mxu0 %v2407_v42  ;;  %v2456_v37 = vld [vmem:[#allocation8 + $0x428] ss:$12 sps:$4 sm:$0xff]  }
  0x9f   :  { %930 = vmatprep.subr.bf16.mxu1 %v2406_v40  ;;  %v2460_v40 = vld [vmem:[#allocation8 + $0x40c] ss:$12 sps:$4 sm:$0xff]   ;;  %v2458_v42 = vld [vmem:[#allocation8 + $0x408] ss:$12 sps:$4 sm:$0xff]  }
  0xa1   :  { %2136 = vmatpush3.bf16.msra.mxu0 %v2408_v43  ;;  %v2462_v43 = vld [vmem:[#allocation8 + $0x350] ss:$12 sps:$4 sm:$0xff]  }
  0xa2   :  { %931 = vmatpush2.bf16.msra.mxu1 %v2404_v41  ;;  %2137 = vmatprep.subr.bf16.mxu0 %v2412_v46  ;;  %v2461_v41 = vld [vmem:[#allocation8 + $0x410] ss:$12 sps:$4 sm:$0xff]  }
  0xa3   :  { %932 = vmatprep.subr.bf16.mxu1 %v2411_v44  ;;  %v2465_v44 = vld [vmem:[#allocation8 + $0x3f4] ss:$12 sps:$4 sm:$0xff]   ;;  %v2463_v46 = vld [vmem:[#allocation8 + $0x3f0] ss:$12 sps:$4 sm:$0xff]  }
  0xa5   :  { %2138 = vmatpush3.bf16.msra.mxu0 %v2413_v47  ;;  %v2467_v47 = vld [vmem:[#allocation8 + $0x338] ss:$12 sps:$4 sm:$0xff]  }
  0xa6   :  { %933 = vmatpush2.bf16.msra.mxu1 %v2409_v45  ;;  %1365 = vmatprep.subr.bf16.mxu0 %v2416_v48  ;;  %v2466_v45 = vld [vmem:[#allocation8 + $0x3f8] ss:$12 sps:$4 sm:$0xff]   ;;  %v2470_v48 = vld [vmem:[#allocation8 + $0x3dc] ss:$12 sps:$4 sm:$0xff]  }
 0x121   :  { %v2117_v51 = vpop.f32.mrf.mxu1 }
 0x123   :  { %v2118_v52 = vpop.f32.mrf.mxu1 }
 0x124   :  { %v2119_v53 = vadd.f32 %v2118_v52, %v2117_v51  ;;  %v2472_v51 = vld [vmem:[#allocation8 + $0x320] ss:$12 sps:$4 sm:$0xff]  }
 0x125   :  { %v2120_v54 = vpop.f32.mrf.mxu1  ;;  %v2473_v52 = vld [vmem:[#allocation8 + $0x3c0] ss:$12 sps:$4 sm:$0xff]  }
 0x126   :  { %v2751_v55 = vadd.f32 %v2119_v53, %v518_v34  ;;  %v2475_v53 = vld [vmem:[#allocation8 + $0x3c4] ss:$12 sps:$4 sm:$0xff]  }
 0x127   :  { %v2121_v56 = vpop.f32.mrf.mxu1 }
 0x128   :  { %v2122_v57 = vadd.f32 %v2121_v56, %v2120_v54  ;;  %v2476_v54 = vld [vmem:[#allocation8 + $0x3c8] ss:$12 sps:$4 sm:$0xff]  }
 0x129   :  { %v571_v58 = vpop.f32.mrf.mxu1  ;;  %v2477_v56 = vld [vmem:[#allocation8 + $0x308] ss:$12 sps:$4 sm:$0xff]  }
 0x12a   :  { %v2753_v59 = vadd.f32 %v2122_v57, %v518_v34  ;;  %v2448_v34 = vld [vmem:[#allocation8 + $0x438] ss:$12 sps:$4 sm:$0xff]  }
 0x12b   :  { %v573_v60 = vpop.f32.mrf.mxu1 }
 0x12d   :  { %v575_v61 = vpop.f32.mrf.mxu1 }
 0x12e   :  { %v580_v0 = vpack.c.bf16 %v575_v61, %v571_v58 }
 0x12f   :  { %v577_v62 = vpop.f32.mrf.mxu1 }
 0x130   :  { %v581_v63 = vpack.c.bf16 %v577_v62, %v573_v60 }
 0x132   :  { %934 = vmatprep.mubr.bf16.mxu1 %v581_v63  ;;  %977 = vmatprep.mubr.bf16.mxu0 %v581_v63 }
 0x133   :  { %1006 = vmatprep.subr.bf16.mxu1 %v581_v63  ;;  %935 = vmatmul.mubr.bf16.vlgmr.msra.gmra.mxu1 %v580_v0 }
 0x134   :  { %978 = vmatmul.mubr.bf16.vlgmr.msra.gmra.mxu0 %v580_v0  ;;  %1007 = vmatpush1.bf16.msra.mxu1 %v580_v0 }
 0x135   :  { %1024 = vmatprep.mubr.bf16.mxu1 %v2665_v33  ;;  %1366 = vmatpush1.bf16.msra.mxu0 %v2414_v1  ;;  %v2451_v33 = vld [vmem:[#allocation8 + $0x440] ss:$12 sps:$4 sm:$0xff]  }
 0x136   :  { %1367 = vmatprep.subr.bf16.mxu0 %v2419_v2  ;;  %2145 = vmatprep.subr.bf16.mxu1 %v2441_v3 }
 0x139   :  { %1368 = vmatpush1.bf16.msra.mxu0 %v2417_v4 }
 0x13a   :  { %1369 = vmatprep.subr.bf16.mxu0 %v2422_v5 }
 0x13b   :  { %2022 = vmatmul.mubr.msk.bf16.vlgmr.msra.gmra.mxu1 %vm533_vm0, %v2733_v35  ;;  %v2434_v35 = vld [vmem:[#allocation8 + $0x31c] ss:$12 sps:$4 sm:$0xff]  }
 0x13c   :  { %2146 = vmatpush3.bf16.msra.mxu1 %v2442_v6 }
 0x13d   :  { %1370 = vmatpush1.bf16.msra.mxu0 %v2420_v7  ;;  %2147 = vmatprep.subr.bf16.mxu1 %v2446_v8 }
 0x13e   :  { %1371 = vmatprep.subr.bf16.mxu0 %v2425_v9 }
 0x140   :  { %2148 = vmatpush3.bf16.msra.mxu1 %v2447_v10 }
 0x141   :  { %1372 = vmatpush1.bf16.msra.mxu0 %v2423_v11  ;;  %2149 = vmatprep.subr.bf16.mxu1 %v2451_v33 }
 0x142   :  { %1373 = vmatprep.subr.bf16.mxu0 %v2428_v12 }
 0x144   :  { %2150 = vmatpush3.bf16.msra.mxu1 %v2452_v13 }
 0x145   :  { %1374 = vmatpush1.bf16.msra.mxu0 %v2426_v14  ;;  %2151 = vmatprep.subr.bf16.mxu1 %v2456_v37 }
 0x146   :  { %1375 = vmatprep.subr.bf16.mxu0 %v2431_v15 }
 0x148   :  { %v456_v23 = vpop.f32.mrf.mxu0  ;;  %2152 = vmatpush3.bf16.msra.mxu1 %v2457_v39 }
 0x149   :  { %1376 = vmatpush1.bf16.msra.mxu0 %v2429_v16  ;;  %v522_v24 = vadd.f32 %v2749_v50, %v456_v23  ;;  %2153 = vmatprep.subr.bf16.mxu1 %v2461_v41  ;;  %v2666_v23 = vmov 0.0  }
 0x14a   :  { %1377 = vmatprep.subr.bf16.mxu0 %v2434_v35  ;;  %v2759_v29 = vpop.f32.mrf.mxu0  ;;  %v2779_v35 = vld [vmem:[#allocation7] sm:$0xff] }
 0x14c   :  { %v460_v31 = vpop.f32.mrf.mxu0  ;;  %2154 = vmatpush3.bf16.msra.mxu1 %v2462_v43 }
 0x14d   :  { %1378 = vmatpush1.bf16.msra.mxu0 %v2432_v17  ;;  %v525_v32 = vadd.f32 %v2749_v50, %v460_v31  ;;  %2155 = vmatprep.subr.bf16.mxu1 %v2466_v45  ;;  %v2468_v50 = vld [vmem:[#allocation8 + $0x3d8] ss:$12 sps:$4 sm:$0xff]   ;;  %v2483_v31 = vld [vmem:[#allocation10 + $0x10] sm:$0xff]  }
 0x14e   :  { %1379 = vmatprep.subr.bf16.mxu0 %v2437_v18  ;;  %v2762_v57 = vpop.f32.mrf.mxu0  ;;  %v2782_v17 = vld [vmem:[#allocation7 + $0x8] sm:$0xff] }
 0x150   :  { %2156 = vmatpush3.bf16.msra.mxu1 %v2467_v47 }
 0x151   :  { %1380 = vmatpush1.bf16.msra.mxu0 %v2435_v19  ;;  %2157 = vmatprep.subr.bf16.mxu1 %v2471_v49  ;;  %v2524_v19 = vld [vmem:[#allocation5] sm:$0xff] }
 0x152   :  { %1381 = vmatprep.subr.bf16.mxu0 %v2440_v20 }
 0x154   :  { %2158 = vmatpush3.bf16.msra.mxu1 %v2472_v51 }
 0x155   :  { %1382 = vmatpush2.bf16.msra.mxu0 %v2438_v21  ;;  %2159 = vmatprep.subr.bf16.mxu1 %v2476_v54 }
 0x156   :  { %1383 = vmatprep.subr.bf16.mxu0 %v2445_v22  ;;  %v2478_v22 = vld [vmem:[#allocation10 + $0x38] sm:$0xff]  }
 0x158   :  { %2160 = vmatpush3.bf16.msra.mxu1 %v2477_v56 }
 0x159   :  { %1384 = vmatpush2.bf16.msra.mxu0 %v2443_v25  ;;  %2198 = vmatprep.subr.bf16.mxu1 %v2666_v23  ;;  %v2481_v25 = vld [vmem:[#allocation10 + $0x20] sm:$0xff]  }
 0x15a   :  { %1385 = vmatprep.subr.bf16.mxu0 %v2450_v30  ;;  %v2482_v30 = vld [vmem:[#allocation10 + $0x18] sm:$0xff]  }
 0x15d   :  { %1386 = vmatpush2.bf16.msra.mxu0 %v2448_v34  ;;  %v2485_v34 = vld [vmem:[#allocation10] sm:$0xff]  }
 0x15e   :  { %1387 = vmatprep.subr.bf16.mxu0 %v2455_v36  ;;  %v513_v36 = vsub.s32 1, %v2738_v27 }
 0x160   :  { %v514_v37 = vrot.slane %v2743_v28, %v513_v36 }
 0x161   :  { %1388 = vmatpush2.bf16.msra.mxu0 %v2453_v38 }
 0x162   :  { %1389 = vmatprep.subr.bf16.mxu0 %v2460_v40  ;;  %v523_v38 = vadd.f32 %v514_v37, %v2759_v29  ;;  %v526_v41 = vadd.f32 %v514_v37, %v2762_v57 }
 0x165   :  { %1390 = vmatpush2.bf16.msra.mxu0 %v2458_v42 }
 0x166   :  { %1391 = vmatprep.subr.bf16.mxu0 %v2465_v44 }
 0x169   :  { %1392 = vmatpush2.bf16.msra.mxu0 %v2463_v46 }
 0x16a   :  { %1393 = vmatprep.subr.bf16.mxu0 %v2470_v48 }
 0x16d   :  { %1394 = vmatpush2.bf16.msra.mxu0 %v2468_v50 }
 0x16e   :  { %1395 = vmatprep.subr.bf16.mxu0 %v2475_v53 }
 0x171   :  { %1396 = vmatpush2.bf16.msra.mxu0 %v2473_v52 }
 0x172   :  { %2218 = vmatprep.subr.bf16.mxu0 %v2666_v23 }
 0x1f3   :  { %v936_v58 = vpop.f32.mrf.mxu1 }
 0x1f4   :  { %v2764_v60 = vadd.f32 %v936_v58, %v522_v24  ;;  %v2139_v61 = vpop.f32.mrf.mxu0  ;;  %v2480_v24 = vld [vmem:[#allocation10 + $0x28] sm:$0xff]  }
 0x1f5   :  { %v2766_v62 = vpop.f32.mrf.mxu1 }
 0x1f6   :  { %v2140_v63 = vpop.f32.mrf.mxu0  ;;  %v987_v42 = vadd.f32 %v2766_v62, %v523_v38 }
 0x1f7   :  { %v2141_v0 = vadd.f32 %v2140_v63, %v2139_v61  ;;  %v940_v1 = vpop.f32.mrf.mxu1 }
 0x1f8   :  { %v2768_v2 = vadd.f32 %v940_v1, %v525_v32  ;;  %v2142_v3 = vpop.f32.mrf.mxu0  ;;  %v2484_v32 = vld [vmem:[#allocation10 + $0x8] sm:$0xff]  }
 0x1f9   :  { %v2771_v4 = vadd.f32 %v2141_v0, %v2751_v55  ;;  %v2773_v5 = vpop.f32.mrf.mxu1 }
 0x1fa   :  { %v2143_v6 = vpop.f32.mrf.mxu0  ;;  %v990_v27 = vadd.f32 %v2773_v5, %v526_v41  ;;  %v2487_v5 = vld [vmem:[#allocation10 + $0x70] sm:$0xff]  }
 0x1fb   :  { %v2144_v7 = vadd.f32 %v2143_v6, %v2142_v3  ;;  %v1026_v8 = vpop.f32.mrf.mxu1  ;;  %v2486_v3 = vld [vmem:[#allocation10 + $0x78] sm:$0xff]  }
 0x1fc   :  { %v1035_v13 = vmul.f32 2.0, %v1026_v8  ;;  %v2525_v6 = vld [vmem:[#allocation2] sm:$0xff]   ;;  %v2489_v8 = vld [vmem:[#allocation10 + $0x60] sm:$0xff]  }
 0x1fd   :  { %v2776_v9 = vadd.f32 %v2144_v7, %v2753_v59  ;;  %v1028_v10 = vpop.f32.mrf.mxu1  ;;  %v2488_v7 = vld [vmem:[#allocation10 + $0x68] sm:$0xff]  }
 0x1fe   :  { %v1036_v33 = vmul.f32 2.0, %v1028_v10  ;;  %v1039_v59 = vsub.f32 %v1035_v13, %v2524_v19  ;;  %v2491_v10 = vld [vmem:[#allocation10 + $0x50] sm:$0xff]  }
 0x1ff   :  { %v1030_v11 = vpop.f32.mrf.mxu1 }
 0x200   :  { %v1037_v12 = vmul.f32 2.0, %v1030_v11  ;;  %v1040_v55 = vsub.f32 %v1036_v33, %v2779_v35  ;;  %v2492_v11 = vld [vmem:[#allocation10 + $0x48] sm:$0xff]   ;;  %v2493_v33 = vld [vmem:[#allocation10 + $0x40] sm:$0xff]  }
 0x201   :  { %v1032_v14 = vpop.f32.mrf.mxu1 }
 0x202   :  { %v1038_v15 = vmul.f32 2.0, %v1032_v14  ;;  %v1041_v16 = vsub.f32 %v1037_v12, %v2725_v26  ;;  %v2479_v26 = vld [vmem:[#allocation10 + $0x30] sm:$0xff]  }
 0x204   :  { %v1042_v18 = vsub.f32 %v1038_v15, %v2782_v17  ;;  %v1043_v21 = vpack.c.bf16 %v1041_v16, %v1039_v59 }
 0x206   :  { %v1044_v20 = vpack.c.bf16 %v1042_v18, %v1040_v55 }
 0x208   :  { %1397 = vmatprep.mubr.bf16.mxu0 %v1044_v20  ;;  %1440 = vmatprep.mubr.bf16.mxu1 %v1044_v20 }
 0x209   :  { %1398 = vmatmul.mubr.bf16.vlgmr.msra.gmra.mxu0 %v1043_v21  ;;  %1441 = vmatmul.mubr.bf16.vlgmr.msra.gmra.mxu1 %v1043_v21 }
 0x20a   :  { %2199 = vmatpush3.bf16.msra.mxu1 %v2478_v22  ;;  %2214 = vmatprep.mubr.msk.bf16.mxu1 %vm2667_vm1, %v2666_v23  ;;  %v2494_v22 = vld [vmem:[#allocation10 + $0xb8] sm:$0xff]  }
 0x20b   :  { %2200 = vmatprep.subr.bf16.mxu1 %v2666_v23  ;;  %2220 = vmatprep.mubr.msk.bf16.mxu0 %vm2667_vm1, %v2666_v23 }
 0x20e   :  { %2201 = vmatpush3.bf16.msra.mxu1 %v2479_v26  ;;  %v2495_v26 = vld [vmem:[#allocation10 + $0xb0] sm:$0xff]  }
 0x20f   :  { %2202 = vmatprep.subr.bf16.mxu1 %v2666_v23 }
 0x212   :  { %2203 = vmatpush3.bf16.msra.mxu1 %v2480_v24  ;;  %v2496_v24 = vld [vmem:[#allocation10 + $0xa8] sm:$0xff]  }
 0x213   :  { %2204 = vmatprep.subr.bf16.mxu1 %v2666_v23 }
 0x216   :  { %2205 = vmatpush3.bf16.msra.mxu1 %v2481_v25  ;;  %v2497_v25 = vld [vmem:[#allocation10 + $0xa0] sm:$0xff]  }
 0x217   :  { %2206 = vmatprep.subr.bf16.mxu1 %v2666_v23 }
 0x21a   :  { %2207 = vmatpush3.bf16.msra.mxu1 %v2482_v30  ;;  %v2498_v30 = vld [vmem:[#allocation10 + $0x98] sm:$0xff]  }
 0x21b   :  { %2208 = vmatprep.subr.bf16.mxu1 %v2666_v23 }
 0x21e   :  { %2209 = vmatpush3.bf16.msra.mxu1 %v2483_v31  ;;  %v2499_v31 = vld [vmem:[#allocation10 + $0x90] sm:$0xff]  }
 0x21f   :  { %2210 = vmatprep.subr.bf16.mxu1 %v2666_v23 }
 0x222   :  { %2211 = vmatpush3.bf16.msra.mxu1 %v2484_v32  ;;  %v2500_v32 = vld [vmem:[#allocation10 + $0x88] sm:$0xff]  }
 0x223   :  { %2212 = vmatprep.subr.bf16.mxu1 %v2666_v23 }
 0x226   :  { %2213 = vmatpush3.bf16.msra.mxu1 %v2485_v34  ;;  %v2501_v34 = vld [vmem:[#allocation10 + $0x80] sm:$0xff]  }
 0x227   :  { %2224 = vmatprep.subr.bf16.mxu1 %v2666_v23 }
 0x2c9   :  { %v1399_v39 = vpop.f32.mrf.mxu0  ;;  %v2161_v40 = vpop.f32.mrf.mxu1 }
 0x2ca   :  { %v2805_v43 = vadd.f32 %v1399_v39, %v2764_v60 }
 0x2cb   :  { %v1401_v44 = vpop.f32.mrf.mxu0  ;;  %v2162_v45 = vpop.f32.mrf.mxu1 }
 0x2cc   :  { %v1450_v46 = vadd.f32 %v1401_v44, %v987_v42  ;;  %v2163_v47 = vadd.f32 %v2162_v45, %v2161_v40 }
 0x2cd   :  { %v1403_v48 = vpop.f32.mrf.mxu0  ;;  %v2164_v49 = vpop.f32.mrf.mxu1 }
 0x2ce   :  { %v2073_v28 = vmul.f32 -1.442695, %v1450_v46  ;;  %v2809_v29 = vadd.f32 %v1403_v48, %v2768_v2  ;;  %v1451_v50 = vadd.f32 %v2163_v47, %v2771_v4 }
 0x2cf   :  { %v1405_v51 = vpop.f32.mrf.mxu0  ;;  %v2165_v52 = vpop.f32.mrf.mxu1 }
 0x2d0   :  { %2502 = vpow2.f32 %v2073_v28  ;;  %v1453_v53 = vadd.f32 %v1405_v51, %v990_v27  ;;  %v2166_v54 = vadd.f32 %v2165_v52, %v2164_v49 }
 0x2d2   :  { %v2074_v56 = vmul.f32 -1.442695, %v1453_v53  ;;  %v1454_v57 = vadd.f32 %v2166_v54, %v2776_v9  ;;  %v2490_v9 = vld [vmem:[#allocation10 + $0x58] sm:$0xff]  }
 0x2d4   :  { %2504 = vpow2.f32 %v2074_v56 }
 0x2dd   :  { %v2503_v58 = vpop.eup %2502 }
 0x2de   :  { %v1473_v60 = vadd.f32 1.0, %v2503_v58 }
 0x2e0   :  { %2506 = vrcp.f32 %v1473_v60 }
 0x2e1   :  { %v2505_v61 = vpop.eup %2504 }
 0x2e2   :  { %v1474_v62 = vadd.f32 1.0, %v2505_v61 }
 0x2e4   :  { %2508 = vrcp.f32 %v1474_v62 }
 0x2ed   :  { %v2507_v63 = vpop.eup %2506 }
 0x2ee   :  { %v2814_v1 = vmul.f32 %v2779_v35, %v2507_v63 }
 0x2f1   :  { %v2509_v0 = vpop.eup %2508 }
 0x2f2   :  { %v2817_v2 = vmul.f32 %v2782_v17, %v2509_v0 }
 0x2f4   :  { %v1481_v4 = vpack.c.bf16 %v2817_v2, %v2814_v1 }
 0x2f6   :  { %2215 = vmatmul.mubr.bf16.vlgmr.msra.gmra.mxu1 %v1481_v4  ;;  %2219 = vmatpush3.bf16.msra.mxu0 %v1481_v4 }
 0x2f7   :  { %2225 = vmatpush3.bf16.msra.mxu1 %v2486_v3  ;;  %2240 = vmatprep.mubr.msk.bf16.mxu1 %vm2667_vm1, %v2666_v23 }
 0x2f8   :  { %2226 = vmatprep.subr.bf16.mxu1 %v2666_v23  ;;  %2244 = vmatprep.subr.bf16.mxu0 %v2666_v23 }
 0x2f9   :  { %2221 = vmatmul.mubr.msk.bf16.vlgmr.msra.gmra.mxu0 %vm533_vm0, %v2525_v6 }
 0x2fa   :  { %2246 = vmatprep.mubr.msk.bf16.mxu0 %vm2667_vm1, %v2666_v23 }
 0x2fb   :  { %2227 = vmatpush3.bf16.msra.mxu1 %v2487_v5 }
 0x2fc   :  { %2228 = vmatprep.subr.bf16.mxu1 %v2666_v23 }
 0x2ff   :  { %2229 = vmatpush3.bf16.msra.mxu1 %v2488_v7 }
 0x300   :  { %2230 = vmatprep.subr.bf16.mxu1 %v2666_v23 }
 0x303   :  { %2231 = vmatpush3.bf16.msra.mxu1 %v2489_v8 }
 0x304   :  { %2232 = vmatprep.subr.bf16.mxu1 %v2666_v23 }
 0x307   :  { %2233 = vmatpush3.bf16.msra.mxu1 %v2490_v9 }
 0x308   :  { %2234 = vmatprep.subr.bf16.mxu1 %v2666_v23 }
 0x30b   :  { %2235 = vmatpush3.bf16.msra.mxu1 %v2491_v10 }
 0x30c   :  { %2236 = vmatprep.subr.bf16.mxu1 %v2666_v23 }
 0x30f   :  { %2237 = vmatpush3.bf16.msra.mxu1 %v2492_v11 }
 0x310   :  { %2238 = vmatprep.subr.bf16.mxu1 %v2666_v23 }
 0x313   :  { %2239 = vmatpush3.bf16.msra.mxu1 %v2493_v33 }
 0x3b6   :  { %v1580_v12 = vpop.f32.mrf.mxu1 }
 0x3b7   :  { %v1587_v13 = vadd.f32 %v1580_v12, %v1451_v50  ;;  %v2072_v50 = vmul.f32 -1.442695, %v2809_v29 }
 0x3b8   :  { %v2216_v14 = vpop.f32.mrf.mxu1 }
 0x3b9   :  { %v1623_v15 = vpop.f32.mrf.mxu0 }
 0x3ba   :  { %v1583_v16 = vpop.f32.mrf.mxu1 }
 0x3bb   :  { %v1588_v55 = vadd.f32 %v1583_v16, %v1454_v57  ;;  %v2222_v18 = vpop.f32.mrf.mxu0 }
 0x3bc   :  { %v2217_v19 = vpop.f32.mrf.mxu1 }
 0x3bd   :  { %v1626_v59 = vpop.f32.mrf.mxu0 }
 0x3be   :  { %v1630_v20 = vpack.c.bf16 %v1626_v59, %v1623_v15 }
 0x3bf   :  { %v2223_v21 = vpop.f32.mrf.mxu0 }
 0x3c0   :  { %2241 = vmatmul.mubr.bf16.vlgmr.msra.gmra.mxu1 %v1630_v20  ;;  %2245 = vmatpush3.bf16.msra.mxu0 %v1630_v20 }
 0x3c1   :  { %2250 = vmatprep.subr.bf16.mxu0 %v2666_v23 }
 0x3c3   :  { %2247 = vmatmul.mubr.msk.bf16.vlgmr.msra.gmra.mxu0 %vm533_vm0, %v2525_v6 }
 0x3c4   :  { %2251 = vmatpush3.bf16.msra.mxu0 %v2494_v22  ;;  %2266 = vmatprep.mubr.msk.bf16.mxu0 %vm2667_vm1, %v2666_v23 }
 0x3c5   :  { %2252 = vmatprep.subr.bf16.mxu0 %v2666_v23 }
 0x3c8   :  { %2253 = vmatpush3.bf16.msra.mxu0 %v2495_v26 }
 0x3c9   :  { %2254 = vmatprep.subr.bf16.mxu0 %v2666_v23 }
 0x3cc   :  { %2255 = vmatpush3.bf16.msra.mxu0 %v2496_v24 }
 0x3cd   :  { %2256 = vmatprep.subr.bf16.mxu0 %v2666_v23 }
 0x3d0   :  { %2257 = vmatpush3.bf16.msra.mxu0 %v2497_v25 }
 0x3d1   :  { %2258 = vmatprep.subr.bf16.mxu0 %v2666_v23 }
 0x3d4   :  { %2259 = vmatpush3.bf16.msra.mxu0 %v2498_v30 }
 0x3d5   :  { %2260 = vmatprep.subr.bf16.mxu0 %v2666_v23 }
 0x3d8   :  { %2261 = vmatpush3.bf16.msra.mxu0 %v2499_v31 }
 0x3d9   :  { %2262 = vmatprep.subr.bf16.mxu0 %v2666_v23 }
 0x3dc   :  { %2263 = vmatpush3.bf16.msra.mxu0 %v2500_v32 }
 0x3dd   :  { %2264 = vmatprep.subr.bf16.mxu0 %v2666_v23  ;;  %v2071_v23 = vmul.f32 -1.442695, %v2805_v43 }
 0x3df   :  { %2510 = vpow2.f32 %v2071_v23 }
 0x3e0   :  { %2265 = vmatpush3.bf16.msra.mxu0 %v2501_v34  ;;  %2512 = vpow2.f32 %v2072_v50 }
 0x3ec   :  { %v2511_v51 = vpop.eup %2510 }
 0x3ed   :  { %v1461_v52 = vadd.f32 1.0, %v2511_v51  ;;  %v2513_v53 = vpop.eup %2512 }
 0x3ee   :  { %v1462_v56 = vadd.f32 1.0, %v2513_v53 }
 0x3ef   :  { %2514 = vrcp.f32 %v1461_v52 }
 0x3fc   :  { %v2515_v63 = vpop.eup %2514 }
 0x3fd   :  { %v1895_v3 = vmul.f32 %v2779_v35, %v2515_v63 }
 0x480   :  { %v1729_v36 = vpop.f32.mrf.mxu1 }
 0x481   :  { %v1736_v37 = vadd.f32 %v1729_v36, %v1587_v13 }
 0x482   :  { %v2242_v38 = vpop.f32.mrf.mxu1 }
 0x483   :  { %v1772_v39 = vpop.f32.mrf.mxu0 }
 0x484   :  { %v1732_v40 = vpop.f32.mrf.mxu1  ;;  %v1779_v44 = vmul.f32 2.0, %v1772_v39 }
 0x485   :  { %v1737_v41 = vadd.f32 %v1732_v40, %v1588_v55  ;;  %v2248_v42 = vpop.f32.mrf.mxu0 }
 0x486   :  { %v2243_v45 = vpop.f32.mrf.mxu1  ;;  %v1781_v49 = vsub.f32 %v1779_v44, %v2814_v1  ;;  %v1897_v1 = vsub.f32 1.0, %v2515_v63 }
 0x487   :  { %v1775_v46 = vpop.f32.mrf.mxu0 }
 0x488   :  { %v1780_v47 = vmul.f32 2.0, %v1775_v46 }
 0x489   :  { %v2249_v48 = vpop.f32.mrf.mxu0 }
 0x48a   :  { %v1782_v27 = vsub.f32 %v1780_v47, %v2817_v2 }
 0x48c   :  { %v1783_v28 = vpack.c.bf16 %v1782_v27, %v1781_v49 }
 0x48e   :  { %2267 = vmatmul.mubr.bf16.vlgmr.msra.gmra.mxu0 %v1783_v28 }
 0x54e   :  { %v1882_v54 = vpop.f32.mrf.mxu0 }
 0x54f   :  { %v1889_v57 = vadd.f32 %v1882_v54, %v1736_v37 }
 0x550   :  { %v2268_v58 = vpop.f32.mrf.mxu0 }
 0x551   :  { %2516 = vtanh.f32 %v1889_v57 }
 0x552   :  { %v1885_v60 = vpop.f32.mrf.mxu0  ;;  %2518 = vrcp.f32 %v1462_v56 }
 0x553   :  { %v1890_v61 = vadd.f32 %v1885_v60, %v1737_v41 }
 0x554   :  { %v2269_v62 = vpop.f32.mrf.mxu0 }
 0x555   :  { %2520 = vtanh.f32 %v1890_v61 }
 0x55e   :  { %v2517_v43 = vpop.eup %2516 }
 0x55f   :  { %v1893_v0 = vadd.f32 %v2517_v43, %v1889_v57  ;;  %v2519_v29 = vpop.eup %2518 }
 0x560   :  { %v1898_v6 = vsub.f32 1.0, %v2519_v29  ;;  %v1896_v9 = vmul.f32 %v2782_v17, %v2519_v29 }
 0x561   :  { %v1899_v2 = vmul.f32 %v1897_v1, %v1893_v0 }
 0x562   :  { %v2521_v4 = vpop.eup %2520 }
 0x563   :  { %v1894_v5 = vadd.f32 %v2521_v4, %v1890_v61  ;;  %v1901_v7 = vadd.f32 %v1899_v2, %v1895_v3 }
 0x565   :  { %v1900_v8 = vmul.f32 %v1898_v6, %v1894_v5  ;;  %1903 = vst [vmem:[#allocation11] sm:$0xff] %v1901_v7 }
 0x567   :  { %v1902_v10 = vadd.f32 %v1900_v8, %v1896_v9 }
 0x569   :  { %1904 = vst [vmem:[#allocation11 + $0x8] sm:$0xff] %v1902_v10 }
 0x56a   :  { %2637 = shalt.err (!%p2634_p1)
}
 0x56b   :  { %1916 = dma.vmem_to_hbm [thread:$0]  %s1911_s27, 256, %s2863_s6, [#allocation4], %s2655_s24, %s2655_s24, %s2656_s25  }
 0x56c   :  { %2652 = dma.done.wait [#allocation4], 256  }
 0x56d   :  { %2653 = vsyncadd [#allocation4], 4294967040 }
 0x56e   :  { %1920 = vsyncpa [#allocation3], 1 }
 0x56f   :  { %1921 = vsyncpa [#allocation6], 1 }
 0x570   :  { %1922 = vsyncpa [#allocation9], 1 }
 0x571   :  { %1923 = vsyncpa [#allocation4], 1 }

</bundles_post_ra>
